<compile_context>
chip_gen: v6e
topology: v6e:2x2x1
jax: 0.10.0
libtpu: 0.0.40
codegen_flags: <defaults>
</compile_context>

<pallas_src>
import functools

import numpy as np
import jax
import jax.numpy as jnp
from jax.experimental import pallas as pl
from jax.experimental.pallas import tpu as pltpu

DROPOUT_P = 0.7
KEEP_P = 1.0 - DROPOUT_P
# P(bits < THRESH) == KEEP_P for uniform uint32 bits. NOTE: numpy scalar, not a
# jax.Array, so it lowers as a literal inside the kernel (no captured constants).
KEEP_THRESHOLD_U32 = np.uint32(int(KEEP_P * (1 << 32)))

HIDDEN = 100        # logical fc1 width (matches the PyTorch module)
HIDDEN_PAD = 128    # padded to a full 128-lane vreg
OUT_PAD = 128       # fc2 output padded 1 -> 128 so the output store is lane-dense


def _round_up(x, m):
    return (x + m - 1) // m * m


def _mlp_kernel(x_ref, bits_ref, w1_ref, b1_ref, w2_ref, b2_ref, o_ref, *, apply_dropout):
    # fc1 + relu (MXU matmul, f32 accumulation)
    h = jnp.dot(x_ref[...], w1_ref[...], preferred_element_type=jnp.float32)
    h = jnp.maximum(h + b1_ref[...], 0.0)                       # (TILE_B, 128)

    if apply_dropout:
        # dropout(p=0.7): integer-threshold compare on precomputed uniform uint32
        # bits (exact to 2^-32). The 1/keep_p rescale is folded into w2 by the
        # wrapper, so the kernel only zeroes dropped lanes.
        keep = bits_ref[...] < KEEP_THRESHOLD_U32
        h = jnp.where(keep, h, 0.0)

    # fc2 + sigmoid. w2 is zero-padded to (128, 128) so the MXU result is a full
    # 128-lane tile and the store is unmasked; the wrapper keeps only column 0.
    y = jnp.dot(h, w2_ref[...], preferred_element_type=jnp.float32)
    o_ref[...] = jax.nn.sigmoid(y + b2_ref[...])


@functools.partial(jax.jit, static_argnames=("training", "use_bf16_matmul"))
def first_model_forward(words_id, emb_table, w1, b1, w2, b2, seed,
                        training=True, use_bf16_matmul=False):
    """Forward pass of FirstModel.

    words_id : (B, S) int32
    emb_table: (V, E) float32          (ScaledEmbedding weights)
    w1       : (S*E, 100) float32      (fc1, stored transposed: y = x @ w1 + b1)
    b1       : (100,)     float32
    w2       : (100, 1)   float32      (fc2, stored transposed)
    b2       : (1,)       float32
    seed     : int32 scalar            (dropout PRNG seed)
    """
    B, S = words_id.shape
    E = emb_table.shape[1]
    SE = S * E

    # Embedding gather + flatten (glue, outside the kernel). Mirrors
    # embeddings(words_id).view(-1, seq_len*emb); .squeeze() is a no-op for B > 1.
    # TODO(synk): for very large B*S*E the gather could be fused into the kernel via
    # PrefetchScalarGridSpec + manual DMA; at these sizes it is not worth it.
    x = jnp.take(emb_table, words_id, axis=0).reshape(B, SE).astype(jnp.float32)

    # Batch tiling: TILE_B rows per grid step (multiple of 8; fills the MXU M dim
    # for realistic batches, degrades gracefully to one small block for tiny B).
    TILE_B = min(256, _round_up(B, 8))
    B_pad = _round_up(B, TILE_B)
    if B_pad != B:
        x = jnp.pad(x, ((0, B_pad - B), (0, 0)))

    # Dropout bits: generated with the portable JAX PRNG (works on TPU and in
    # interpret mode), one independent draw per (row, hidden lane).
    bits = jax.random.bits(jax.random.PRNGKey(seed), (B_pad, HIDDEN_PAD), dtype=jnp.uint32)

    # Pad hidden 100 -> 128 and fc2 out 1 -> 128 (zero padding is numerically inert
    # through relu/dropout/matmul); fold the dropout 1/keep_p rescale into w2
    # (training semantics of F.dropout).
    w1_p = jnp.zeros((SE, HIDDEN_PAD), jnp.float32).at[:, :HIDDEN].set(w1)
    b1_p = jnp.zeros((1, HIDDEN_PAD), jnp.float32).at[0, :HIDDEN].set(b1)
    w2_eff = (w2 * (1.0 / KEEP_P)) if training else w2
    w2_p = jnp.zeros((HIDDEN_PAD, OUT_PAD), jnp.float32).at[:HIDDEN, :1].set(w2_eff)
    b2_p = jnp.zeros((1, OUT_PAD), jnp.float32).at[0, :1].set(b2)

    if use_bf16_matmul:
        # Optional bf16 MXU feed (v6e/v7x); accumulation stays f32 in the kernel.
        x = x.astype(jnp.bfloat16)
        w1_p = w1_p.astype(jnp.bfloat16)

    grid = (B_pad // TILE_B,)

    bytes_accessed = (
        x.size * x.dtype.itemsize + bits.size * 4
        + w1_p.size * w1_p.dtype.itemsize + b1_p.size * 4
        + w2_p.size * 4 + b2_p.size * 4
        + B_pad * OUT_PAD * 4
    )
    cost = pl.CostEstimate(
        flops=2 * B_pad * (SE * HIDDEN_PAD + HIDDEN_PAD * OUT_PAD),
        transcendentals=B_pad * OUT_PAD,
        bytes_accessed=bytes_accessed,
    )

    out = pl.pallas_call(
        functools.partial(_mlp_kernel, apply_dropout=training),
        out_shape=jax.ShapeDtypeStruct((B_pad, OUT_PAD), jnp.float32),
        grid=grid,
        in_specs=[
            pl.BlockSpec((TILE_B, SE), lambda i: (i, 0)),            # x tile
            pl.BlockSpec((TILE_B, HIDDEN_PAD), lambda i: (i, 0)),    # dropout bits tile
            pl.BlockSpec((SE, HIDDEN_PAD), lambda i: (0, 0)),        # w1 (VMEM-resident)
            pl.BlockSpec((1, HIDDEN_PAD), lambda i: (0, 0)),         # b1
            pl.BlockSpec((HIDDEN_PAD, OUT_PAD), lambda i: (0, 0)),   # w2
            pl.BlockSpec((1, OUT_PAD), lambda i: (0, 0)),            # b2
        ],
        out_specs=pl.BlockSpec((TILE_B, OUT_PAD), lambda i: (i, 0)),
        compiler_params=pltpu.CompilerParams(
            dimension_semantics=("parallel",),
            vmem_limit_bytes=32 * 1024 * 1024,
        ),
        cost_estimate=cost,
    )(x, bits, w1_p, b1_p, w2_p, b2_p)

    # Keep only the real rows and the real (single) output column -> (B, 1).
    return out[:B, :1]


def init_params(key, vocab_size, embedding_dim, seq_len, hidden=HIDDEN):
    k_emb, k_w1, k_b1, k_w2, k_b2 = jax.random.split(key, 5)
    in_features = seq_len * embedding_dim
    # ScaledEmbedding: weights ~ N(0, 1/embedding_dim)
    emb_table = jax.random.normal(k_emb, (vocab_size, embedding_dim), jnp.float32) / embedding_dim
    # nn.Linear-style init (uniform in +/- 1/sqrt(fan_in)), stored transposed as (in, out).
    lim1 = 1.0 / jnp.sqrt(in_features)
    w1 = jax.random.uniform(k_w1, (in_features, hidden), jnp.float32, -lim1, lim1)
    b1 = jax.random.uniform(k_b1, (hidden,), jnp.float32, -lim1, lim1)
    lim2 = 1.0 / jnp.sqrt(hidden)
    w2 = jax.random.uniform(k_w2, (hidden, 1), jnp.float32, -lim2, lim2)
    b2 = jax.random.uniform(k_b2, (1,), jnp.float32, -lim2, lim2)
    return emb_table, w1, b1, w2, b2


if __name__ == "__main__":
    # Small shapes consistent with the module's forward.
    batch, seq_len, embedding_dim, vocab_size = 8, 4, 32, 50

    key = jax.random.PRNGKey(0)
    k_params, k_ids = jax.random.split(key)
    emb_table, w1, b1, w2, b2 = init_params(k_params, vocab_size, embedding_dim, seq_len)
    words_id = jax.random.randint(k_ids, (batch, seq_len), 0, vocab_size, dtype=jnp.int32)

    out = first_model_forward(words_id, emb_table, w1, b1, w2, b2, seed=0)
    out = jax.block_until_ready(out)

    assert out.shape == (batch, 1)
    assert bool(jnp.all((out >= 0.0) & (out <= 1.0)))
    print("KERNEL_OK")
</pallas_src>

<mosaic_0001>
module attributes {stable_mosaic.version = 11 : i64} {
  func.func @_mlp_kernel(%arg0: i32, %arg1: memref<8x128xf32, #tpu.memory_space<vmem>>, %arg2: memref<8x128xi32, #tpu.memory_space<vmem>>, %arg3: memref<128x128xf32, #tpu.memory_space<vmem>>, %arg4: memref<1x128xf32, #tpu.memory_space<vmem>>, %arg5: memref<128x128xf32, #tpu.memory_space<vmem>>, %arg6: memref<1x128xf32, #tpu.memory_space<vmem>>, %arg7: memref<8x128xf32, #tpu.memory_space<vmem>>) attributes {dimension_semantics = [#tpu.dimension_semantics<parallel>], iteration_bounds = array<i64: 1>, scalar_prefetch = 0 : i64, scratch_operands = 0 : i64, tpu.core_type = #tpu.core_type<tc>, window_params = [{transform_indices = @transform_0, window_bounds = array<i64: 8, 128>}, {transform_indices = @transform_1, window_bounds = array<i64: 8, 128>}, {pipeline_mode = #tpu.pipeline_mode<synchronous>, transform_indices = @transform_2, window_bounds = array<i64: 128, 128>}, {pipeline_mode = #tpu.pipeline_mode<synchronous>, transform_indices = @transform_3, window_bounds = array<i64: 1, 128>}, {pipeline_mode = #tpu.pipeline_mode<synchronous>, transform_indices = @transform_4, window_bounds = array<i64: 128, 128>}, {pipeline_mode = #tpu.pipeline_mode<synchronous>, transform_indices = @transform_5, window_bounds = array<i64: 1, 128>}, {transform_indices = @transform_6, window_bounds = array<i64: 8, 128>}]} {
    %c0 = arith.constant 0 : index
    %c0_0 = arith.constant 0 : index
    %0 = vector.load %arg1[%c0, %c0_0] : memref<8x128xf32, #tpu.memory_space<vmem>>, vector<8x128xf32>
    %c0_1 = arith.constant 0 : index
    %c0_2 = arith.constant 0 : index
    %1 = vector.load %arg3[%c0_1, %c0_2] : memref<128x128xf32, #tpu.memory_space<vmem>>, vector<128x128xf32>
    %cst = arith.constant dense<0.000000e+00> : vector<8x128xf32>
    %2 = tpu.matmul %0, %1, %cst {dimension_numbers = #tpu.dot_dimension_numbers<[1], [0], [0], [1], [0, 0, 1, 1], [], []>} : vector<8x128xf32>, vector<128x128xf32>, vector<8x128xf32> -> vector<8x128xf32>
    %c0_3 = arith.constant 0 : index
    %c0_4 = arith.constant 0 : index
    %3 = vector.load %arg4[%c0_3, %c0_4] : memref<1x128xf32, #tpu.memory_space<vmem>>, vector<1x128xf32>
    %4 = vector.broadcast %3 : vector<1x128xf32> to vector<8x128xf32>
    %5 = arith.addf %2, %4 : vector<8x128xf32>
    %cst_5 = arith.constant 0.000000e+00 : f32
    %6 = vector.broadcast %cst_5 : f32 to vector<8x128xf32>
    %7 = arith.maximumf %5, %6 : vector<8x128xf32>
    %c0_6 = arith.constant 0 : index
    %c0_7 = arith.constant 0 : index
    %8 = vector.load %arg2[%c0_6, %c0_7] : memref<8x128xi32, #tpu.memory_space<vmem>>, vector<8x128xi32>
    %c1288490188_i32 = arith.constant 1288490188 : i32
    %9 = vector.broadcast %c1288490188_i32 : i32 to vector<8x128xi32>
    %10 = arith.cmpi ult, %8, %9 : vector<8x128xi32>
    %cst_8 = arith.constant 0.000000e+00 : f32
    %11 = vector.broadcast %cst_8 : f32 to vector<8x128xf32>
    %12 = arith.select %10, %7, %11 : vector<8x128xi1>, vector<8x128xf32>
    %c0_9 = arith.constant 0 : index
    %c0_10 = arith.constant 0 : index
    %13 = vector.load %arg5[%c0_9, %c0_10] : memref<128x128xf32, #tpu.memory_space<vmem>>, vector<128x128xf32>
    %cst_11 = arith.constant dense<0.000000e+00> : vector<8x128xf32>
    %14 = tpu.matmul %12, %13, %cst_11 {dimension_numbers = #tpu.dot_dimension_numbers<[1], [0], [0], [1], [0, 0, 1, 1], [], []>} : vector<8x128xf32>, vector<128x128xf32>, vector<8x128xf32> -> vector<8x128xf32>
    %c0_12 = arith.constant 0 : index
    %c0_13 = arith.constant 0 : index
    %15 = vector.load %arg6[%c0_12, %c0_13] : memref<1x128xf32, #tpu.memory_space<vmem>>, vector<1x128xf32>
    %16 = vector.broadcast %15 : vector<1x128xf32> to vector<8x128xf32>
    %17 = arith.addf %14, %16 : vector<8x128xf32>
    %18 = arith.negf %17 : vector<8x128xf32>
    %19 = math.exp %18 : vector<8x128xf32>
    %cst_14 = arith.constant 1.000000e+00 : f32
    %20 = vector.broadcast %cst_14 : f32 to vector<8x128xf32>
    %21 = arith.addf %20, %19 : vector<8x128xf32>
    %22 = arith.divf %20, %21 : vector<8x128xf32>
    %c0_15 = arith.constant 0 : index
    %c0_16 = arith.constant 0 : index
    %23 = vector.load %arg7[%c0_15, %c0_16] : memref<8x128xf32, #tpu.memory_space<vmem>>, vector<8x128xf32>
    tpu.vector_store %arg7[%c0_15, %c0_16], %22 {strides = array<i32>} : memref<8x128xf32, #tpu.memory_space<vmem>>, vector<8x128xf32>,
    return
  }
  func.func @transform_0(%arg0: i32) -> (i32, i32) {
    %c0_i32 = arith.constant 0 : i32
    %c0_i32_0 = arith.constant 0 : i32
    return %arg0, %c0_i32 : i32, i32
  }
  func.func @transform_1(%arg0: i32) -> (i32, i32) {
    %c0_i32 = arith.constant 0 : i32
    %c0_i32_0 = arith.constant 0 : i32
    return %arg0, %c0_i32 : i32, i32
  }
  func.func @transform_2(%arg0: i32) -> (i32, i32) {
    %c0_i32 = arith.constant 0 : i32
    %c0_i32_0 = arith.constant 0 : i32
    %c0_i32_1 = arith.constant 0 : i32
    return %c0_i32, %c0_i32_0 : i32, i32
  }
  func.func @transform_3(%arg0: i32) -> (i32, i32) {
    %c0_i32 = arith.constant 0 : i32
    %c0_i32_0 = arith.constant 0 : i32
    %c0_i32_1 = arith.constant 0 : i32
    return %c0_i32, %c0_i32_0 : i32, i32
  }
  func.func @transform_4(%arg0: i32) -> (i32, i32) {
    %c0_i32 = arith.constant 0 : i32
    %c0_i32_0 = arith.constant 0 : i32
    %c0_i32_1 = arith.constant 0 : i32
    return %c0_i32, %c0_i32_0 : i32, i32
  }
  func.func @transform_5(%arg0: i32) -> (i32, i32) {
    %c0_i32 = arith.constant 0 : i32
    %c0_i32_0 = arith.constant 0 : i32
    %c0_i32_1 = arith.constant 0 : i32
    return %c0_i32, %c0_i32_0 : i32, i32
  }
  func.func @transform_6(%arg0: i32) -> (i32, i32) {
    %c0_i32 = arith.constant 0 : i32
    %c0_i32_0 = arith.constant 0 : i32
    return %arg0, %c0_i32 : i32, i32
  }
}

</mosaic_0001>

<bundles_post_ra>
// kernel: first_model_forward.1
= control target key start
LH: loop header
LB: loop body
LE: loop exit
PB: predicated region body
PF: predicated region fallthrough
CT: control target
= control target key end

     0   :  { %v339_v0 = vmov 0.0   ;;  %vm340_vm0 = vmmov 0   ;;  %s521_s2 = inlined_call_operand.vmem [shape: f32[128,128], index: 2, kind: input, shape index: {}]   ;;  %s522_s4 = inlined_call_operand.vmem [shape: f32[128,128], index: 4, kind: input, shape index: {}]   ;;  %s523_s0 = inlined_call_operand.vmem [shape: f32[8,128], index: 0, kind: input, shape index: {}]   ;;  %s524_s3 = inlined_call_operand.vmem [shape: f32[1,128], index: 3, kind: input, shape index: {}]   ;;  %s525_s1 = inlined_call_operand.vmem [shape: u32[8,128], index: 1, kind: input, shape index: {}]   ;;  %s526_s5 = inlined_call_operand.vmem [shape: f32[1,128], index: 5, kind: input, shape index: {}]   ;;  %s527_s6 = inlined_call_operand.vmem [shape: f32[8,128], index: 6, kind: output, shape index: {}]  }
   0x1   :  { %263 = vmatprep.subr.mxu0 %v339_v0  ;;  %v39_v1 = vld [vmem:[%s521_s2 + $0x78] sm:$0xff]  ;;  %v38_v2 = vld [vmem:[%s521_s2 + $0x70] sm:$0xff]  ;;  %295 = vmatprep.mubr.msk.f32.mxu0 %vm340_vm0, %v339_v0  ;;  %v37_v3 = vld [vmem:[%s521_s2 + $0x68] sm:$0xff] }
   0x2   :  { %264 = vmatpush3.msra.mxu0 %v39_v1  ;;  %298 = vmatprep.subr.mxu1 %v339_v0  ;;  %v36_v4 = vld [vmem:[%s521_s2 + $0x60] sm:$0xff]  ;;  %v136_v5 = vld [vmem:[%s522_s4 + $0x78] sm:$0xff]  ;;  %v135_v7 = vld [vmem:[%s522_s4 + $0x70] sm:$0xff] }
   0x3   :  { %265 = vmatprep.subr.mxu0 %v339_v0  ;;  %330 = vmatprep.mubr.msk.f32.mxu1 %vm340_vm0, %v339_v0  ;;  %v35_v6 = vld [vmem:[%s521_s2 + $0x58] sm:$0xff]  ;;  %v134_v8 = vld [vmem:[%s522_s4 + $0x68] sm:$0xff]  ;;  %v34_v9 = vld [vmem:[%s521_s2 + $0x50] sm:$0xff] }
   0x4   :  { %266 = vmatpush3.msra.mxu0 %v38_v2  ;;  %299 = vmatpush3.msra.mxu1 %v136_v5  ;;  %v133_v10 = vld [vmem:[%s522_s4 + $0x60] sm:$0xff]  ;;  %v33_v11 = vld [vmem:[%s521_s2 + $0x48] sm:$0xff]  ;;  %v132_v12 = vld [vmem:[%s522_s4 + $0x58] sm:$0xff] }
   0x5   :  { %267 = vmatprep.subr.mxu0 %v339_v0  ;;  %300 = vmatprep.subr.mxu1 %v339_v0  ;;  %v32_v13 = vld [vmem:[%s521_s2 + $0x40] sm:$0xff]  ;;  %v131_v14 = vld [vmem:[%s522_s4 + $0x50] sm:$0xff]  ;;  %v31_v15 = vld [vmem:[%s521_s2 + $0x38] sm:$0xff] }
   0x6   :  { %268 = vmatpush3.msra.mxu0 %v37_v3  ;;  %301 = vmatpush3.msra.mxu1 %v135_v7  ;;  %v130_v16 = vld [vmem:[%s522_s4 + $0x48] sm:$0xff]  ;;  %v30_v17 = vld [vmem:[%s521_s2 + $0x30] sm:$0xff]  ;;  %v129_v18 = vld [vmem:[%s522_s4 + $0x40] sm:$0xff] }
   0x7   :  { %269 = vmatprep.subr.mxu0 %v339_v0  ;;  %302 = vmatprep.subr.mxu1 %v339_v0  ;;  %v29_v19 = vld [vmem:[%s521_s2 + $0x28] sm:$0xff]  ;;  %v128_v20 = vld [vmem:[%s522_s4 + $0x38] sm:$0xff]  ;;  %v28_v21 = vld [vmem:[%s521_s2 + $0x20] sm:$0xff] }
   0x8   :  { %270 = vmatpush3.msra.mxu0 %v36_v4  ;;  %303 = vmatpush3.msra.mxu1 %v134_v8  ;;  %v127_v22 = vld [vmem:[%s522_s4 + $0x30] sm:$0xff]  ;;  %v27_v23 = vld [vmem:[%s521_s2 + $0x18] sm:$0xff]  ;;  %v126_v24 = vld [vmem:[%s522_s4 + $0x28] sm:$0xff] }
   0x9   :  { %271 = vmatprep.subr.mxu0 %v339_v0  ;;  %304 = vmatprep.subr.mxu1 %v339_v0  ;;  %v26_v25 = vld [vmem:[%s521_s2 + $0x10] sm:$0xff]  ;;  %v125_v26 = vld [vmem:[%s522_s4 + $0x20] sm:$0xff]  ;;  %v25_v27 = vld [vmem:[%s521_s2 + $0x8] sm:$0xff] }
   0xa   :  { %272 = vmatpush3.msra.mxu0 %v35_v6  ;;  %305 = vmatpush3.msra.mxu1 %v133_v10  ;;  %v124_v28 = vld [vmem:[%s522_s4 + $0x18] sm:$0xff]  ;;  %v24_v29 = vld [vmem:[%s521_s2] sm:$0xff]  ;;  %v123_v31 = vld [vmem:[%s522_s4 + $0x10] sm:$0xff] }
   0xb   :  { %273 = vmatprep.subr.mxu0 %v339_v0  ;;  %306 = vmatprep.subr.mxu1 %v339_v0  ;;  %v23_v30 = vld [vmem:[%s523_s0] sm:$0xff]  ;;  %v122_v32 = vld [vmem:[%s522_s4 + $0x8] sm:$0xff] }
   0xc   :  { %274 = vmatpush3.msra.mxu0 %v34_v9  ;;  %307 = vmatpush3.msra.mxu1 %v132_v12  ;;  %v121_v33 = vld [vmem:[%s522_s4] sm:$0xff] }
   0xd   :  { %275 = vmatprep.subr.mxu0 %v339_v0  ;;  %308 = vmatprep.subr.mxu1 %v339_v0  ;;  %v225_v34 = vld [vmem:[%s524_s3] ss:$0 sm:$0xff] }
   0xe   :  { %276 = vmatpush3.msra.mxu0 %v33_v11  ;;  %309 = vmatpush3.msra.mxu1 %v131_v14  ;;  %v118_v35 = vld [vmem:[%s525_s1] sm:$0xff] }
   0xf   :  { %277 = vmatprep.subr.mxu0 %v339_v0  ;;  %310 = vmatprep.subr.mxu1 %v339_v0  ;;  %vm119_vm1 = vcmp.lt.u32.totalorder %v118_v35, 1288490188  ;;  %v226_v40 = vld [vmem:[%s526_s5] ss:$0 sm:$0xff] }
  0x10   :  { %278 = vmatpush3.msra.mxu0 %v32_v13  ;;  %311 = vmatpush3.msra.mxu1 %v130_v16 }
  0x11   :  { %279 = vmatprep.subr.mxu0 %v339_v0  ;;  %312 = vmatprep.subr.mxu1 %v339_v0 }
  0x12   :  { %280 = vmatpush3.msra.mxu0 %v31_v15  ;;  %313 = vmatpush3.msra.mxu1 %v129_v18 }
  0x13   :  { %281 = vmatprep.subr.mxu0 %v339_v0  ;;  %314 = vmatprep.subr.mxu1 %v339_v0 }
  0x14   :  { %282 = vmatpush3.msra.mxu0 %v30_v17  ;;  %315 = vmatpush3.msra.mxu1 %v128_v20 }
  0x15   :  { %283 = vmatprep.subr.mxu0 %v339_v0  ;;  %316 = vmatprep.subr.mxu1 %v339_v0 }
  0x16   :  { %284 = vmatpush3.msra.mxu0 %v29_v19  ;;  %317 = vmatpush3.msra.mxu1 %v127_v22 }
  0x17   :  { %285 = vmatprep.subr.mxu0 %v339_v0  ;;  %318 = vmatprep.subr.mxu1 %v339_v0 }
  0x18   :  { %286 = vmatpush3.msra.mxu0 %v28_v21  ;;  %319 = vmatpush3.msra.mxu1 %v126_v24 }
  0x19   :  { %287 = vmatprep.subr.mxu0 %v339_v0  ;;  %320 = vmatprep.subr.mxu1 %v339_v0 }
  0x1a   :  { %288 = vmatpush3.msra.mxu0 %v27_v23  ;;  %321 = vmatpush3.msra.mxu1 %v125_v26 }
  0x1b   :  { %289 = vmatprep.subr.mxu0 %v339_v0  ;;  %322 = vmatprep.subr.mxu1 %v339_v0 }
  0x1c   :  { %290 = vmatpush3.msra.mxu0 %v26_v25  ;;  %323 = vmatpush3.msra.mxu1 %v124_v28 }
  0x1d   :  { %291 = vmatprep.subr.mxu0 %v339_v0  ;;  %324 = vmatprep.subr.mxu1 %v339_v0 }
  0x1e   :  { %292 = vmatpush3.msra.mxu0 %v25_v27  ;;  %325 = vmatpush3.msra.mxu1 %v123_v31 }
  0x1f   :  { %293 = vmatprep.subr.mxu0 %v339_v0  ;;  %326 = vmatprep.subr.mxu1 %v339_v0 }
  0x20   :  { %294 = vmatpush3.msra.mxu0 %v24_v29  ;;  %327 = vmatpush3.msra.mxu1 %v122_v32 }
  0x21   :  { %296 = vmatmul.mubr.f32.vlgmr.msra.gmra.mxu0 %v23_v30  ;;  %328 = vmatprep.subr.mxu1 %v339_v0 }
  0x22   :  { %329 = vmatpush3.msra.mxu1 %v121_v33 }
  0xe1   :  { %v113_v36 = vpop.f32.mrf.mxu0 }
  0xe2   :  { %v114_v37 = vadd.f32 %v225_v34, %v113_v36 }
  0xe3   :  { %v297_v38 = vpop.f32.mrf.mxu0 }
  0xe4   :  { %v117_v39 = vmax.f32 %v114_v37, 0.0 }
  0xe6   :  { %331 = vmatmul.mubr.msk.f32.vlgmr.msra.gmra.mxu1 %vm119_vm1, %v117_v39 }
 0x1a6   :  { %v210_v41 = vpop.f32.mrf.mxu1 }
 0x1a7   :  { %v211_v42 = vadd.f32 %v226_v40, %v210_v41 }
 0x1a8   :  { %v332_v43 = vpop.f32.mrf.mxu1 }
 0x1a9   :  { %v228_v44 = vmul.f32 -1.442695, %v211_v42 }
 0x1ab   :  { %335 = vpow2.f32 %v228_v44 }
 0x1b8   :  { %v336_v45 = vpop.eup %335 }
 0x1b9   :  { %v217_v46 = vadd.f32 1.0, %v336_v45 }
 0x1bb   :  { %337 = vrcp.f32 %v217_v46 }
 0x1c8   :  { %v338_v47 = vpop.eup %337 }
 0x1c9   :  { %220 = vst [vmem:[%s527_s6] sm:$0xff] %v338_v47 }

</bundles_post_ra>
